<compile_context>
chip_gen: v5e
topology: v5e:2x2
jax: 0.10.0
libtpu: 0.0.40
codegen_flags: <defaults>
</compile_context>

<pallas_src>
import functools
import math

import numpy as np

import jax
import jax.numpy as jnp
from jax.experimental import pallas as pl
from jax.experimental.pallas import tpu as pltpu

LANE = 128


def _rup(x, m):
    return ((x + m - 1) // m) * m


# ----------------------------- Pallas kernel --------------------------------
def iqn_kernel(xT_ref, tauT_ref, w_ref, out_ref, *, dims):
    """Transposed MLP: features on sublanes, batch*quantile rows on lanes."""
    Ds, Da, Hs, Ha, E, T, Hf = dims
    Din, HsHa = Ds + Da, Hs + Ha
    f32 = jnp.float32
    C = w_ref.shape[1]

    # static row offsets of each weight block inside the packed buffer
    o_in = 0
    o_mid = _rup(HsHa, 8)
    o_f = o_mid + _rup(2 * E, 8)

    relu = lambda v: jnp.maximum(v, 0.0)

    x = xT_ref[...]                                 # [Din, TM]  ([state|action]^T)
    tau = tauT_ref[...]                             # [1,   TM]

    # static slices of the single packed parameter buffer (weights + biases)
    w_in = w_ref[o_in:o_in + HsHa, 0:Din]           # block-diag fc_state + fc_action
    b_in = w_ref[o_in:o_in + HsHa, C - 1:C]
    w_mid = w_ref[o_mid:o_mid + 2 * E, 0:HsHa + T]  # block-diag fc_state_action + head_tau
    b_mid = w_ref[o_mid:o_mid + 2 * E, C - 1:C]
    w_f = w_ref[o_f:o_f + Hf, 0:E]                  # hidden_layers_f
    b_f = w_ref[o_f:o_f + Hf, C - 1:C]
    w_head = w_ref[o_f:o_f + Hf, C - 2:C - 1]       # head weight (as a column)
    b_head = w_ref[o_f:o_f + 1, C - 3:C - 2]        # head bias (scalar)

    # fused state/action branch -> [h_s ; h_a]
    h_in = relu(jnp.dot(w_in, x, preferred_element_type=f32) + b_in)       # [HsHa, TM]

    # cosine tau embedding: cos(pi * i * tau), i = 0..T-1  (EUP slot)
    if T > 1:
        i_col = jax.lax.broadcasted_iota(jnp.int32, (T, 1), 0).astype(f32)
        a_tau = jnp.cos(i_col * (f32(math.pi) * tau))                      # [T, TM]
    else:
        a_tau = tau                                                        # [1, TM]

    # fused joint/tau embedding: [[Wsa 0];[0 Wtau]] @ [h_in ; a_tau]
    stacked = jnp.concatenate([h_in, a_tau], axis=0)                       # [HsHa+T, TM]
    e = relu(jnp.dot(w_mid, stacked, preferred_element_type=f32) + b_mid)  # [2E, TM]
    prod = e[0:E, :] * e[E:2 * E, :]                                       # e_sa * e_tau

    # hidden layer + head (head = VPU mul + sublane reduce, no MXU round trip)
    h = relu(jnp.dot(w_f, prod, preferred_element_type=f32) + b_f)         # [Hf, TM]
    out = jnp.sum(h * w_head, axis=0, keepdims=True) + b_head              # [1, TM]
    out_ref[...] = out.astype(out_ref.dtype)


# --------------------------- parameter handling ------------------------------
def infer_dims(p):
    Hs, Ds = p["Ws"].shape
    Ha, Da = p["Wa"].shape
    E = p["Wsa"].shape[0]
    T = p["Wtau"].shape[1]
    Hf = p["Wf"].shape[0]
    return (Ds, Da, Hs, Ha, E, T, Hf)


def pack_params(p, dims=None):
    """Pack ALL weights, biases and the head into ONE [R, C] f32 buffer.

    Done once on the host with plain numpy (no per-call XLA scatter ops).
    Layout (rows, each block rounded up to 8 sublanes):
      [0          : HsHa)        block-diag [Ws 0; 0 Wa]     cols [0:Din)
      [o_mid      : o_mid+2E)    block-diag [Wsa 0; 0 Wtau]  cols [0:HsHa+T)
      [o_f        : o_f+Hf)      Wf                          cols [0:E)
    Spare lanes:  col C-1 = biases, col C-2 = head weight, col C-3 = head bias.
    """
    if dims is None:
        dims = infer_dims(p)
    Ds, Da, Hs, Ha, E, T, Hf = dims
    Din, HsHa = Ds + Da, Hs + Ha
    o_in = 0
    o_mid = _rup(HsHa, 8)
    o_f = o_mid + _rup(2 * E, 8)
    R = o_f + _rup(Hf, 8)
    C = _rup(max(Din, HsHa + T, E) + 3, LANE)   # +3 spare lanes for bias/head cols

    W = np.zeros((R, C), np.float32)
    # front block-diag [Ws 0; 0 Wa] + biases
    W[o_in:o_in + Hs, 0:Ds] = np.asarray(p["Ws"])
    W[o_in + Hs:o_in + HsHa, Ds:Din] = np.asarray(p["Wa"])
    W[o_in:o_in + Hs, C - 1] = np.asarray(p["bs"])
    W[o_in + Hs:o_in + HsHa, C - 1] = np.asarray(p["ba"])
    # fused mid block-diag [Wsa 0; 0 Wtau] + biases
    W[o_mid:o_mid + E, 0:HsHa] = np.asarray(p["Wsa"])
    W[o_mid + E:o_mid + 2 * E, HsHa:HsHa + T] = np.asarray(p["Wtau"])
    W[o_mid:o_mid + E, C - 1] = np.asarray(p["bsa"])
    W[o_mid + E:o_mid + 2 * E, C - 1] = np.asarray(p["btau"])
    # hidden_layers_f + head folded into spare columns
    W[o_f:o_f + Hf, 0:E] = np.asarray(p["Wf"])
    W[o_f:o_f + Hf, C - 1] = np.asarray(p["bf"])
    W[o_f:o_f + Hf, C - 2] = np.asarray(p["whead"]).reshape(Hf)
    W[o_f, C - 3] = float(np.asarray(p["bhead"]).reshape(()))
    return jnp.asarray(W)


def _linear_init(key, fan_in, fan_out):
    """PyTorch nn.Linear default init, native [out, in] layout."""
    kw, kb = jax.random.split(key)
    bound = 1.0 / math.sqrt(fan_in)
    W = jax.random.uniform(kw, (fan_out, fan_in), jnp.float32, -bound, bound)
    b = jax.random.uniform(kb, (fan_out,), jnp.float32, -bound, bound)
    return W, b


def init_params(key, dim_state, dim_action, h_state, h_action,
                embedding_dim, tau_embed_dim, h_f):
    ks = jax.random.split(key, 6)
    p = {}
    p["Ws"], p["bs"] = _linear_init(ks[0], dim_state, h_state)
    p["Wa"], p["ba"] = _linear_init(ks[1], dim_action, h_action)
    p["Wsa"], p["bsa"] = _linear_init(ks[2], h_state + h_action, embedding_dim)
    p["Wtau"], p["btau"] = _linear_init(ks[3], tau_embed_dim, embedding_dim)
    p["Wf"], p["bf"] = _linear_init(ks[4], embedding_dim, h_f)
    # head: uniform(-3e-4, 3e-4) weight, zero bias (module __init__)
    p["whead"] = jax.random.uniform(ks[5], (1, h_f), jnp.float32, -3e-4, 3e-4)
    p["bhead"] = jnp.zeros((1,), jnp.float32)
    return p


# ------------------------------ launch helpers -------------------------------
def _choose_tile(m_pad):
    """Lane tile of the fused batch*quantile dimension.

    Small M -> single grid step (per-step overhead dominates, params < 1 MiB).
    Large M -> pick a tile giving an even grid (>= 4 steps when possible) so
    the 'parallel' axis splits across both v7x TensorCores with an intra-core
    pipeline; tiles stay >= 256 lanes to amortize per-step overhead on
    single-core v5e/v6e.
    """
    if m_pad <= 512:
        return m_pad
    for tm in (512, 256, 128):
        if m_pad % tm == 0 and (m_pad // tm) % 2 == 0 and m_pad // tm >= 4:
            return tm
    for tm in (512, 256, 128):
        if m_pad % tm == 0:
            return tm
    return 128


def _launch(xT, tauT, wpack, dims):
    Din = dims[0] + dims[1]
    M_pad = xT.shape[1]
    TM = _choose_tile(M_pad)
    grid = (M_pad // TM,)
    return pl.pallas_call(
        functools.partial(iqn_kernel, dims=dims),
        out_shape=jax.ShapeDtypeStruct((1, M_pad), jnp.float32),
        grid=grid,
        in_specs=[
            pl.BlockSpec((Din, TM), lambda i: (0, i)),     # inputs tiled over rows
            pl.BlockSpec((1, TM), lambda i: (0, i)),
            pl.BlockSpec(wpack.shape, lambda i: (0, 0)),   # params resident in VMEM
        ],
        out_specs=pl.BlockSpec((1, TM), lambda i: (0, i)),  # lane-dense output
        compiler_params=pltpu.CompilerParams(
            dimension_semantics=("parallel",)),             # v7x: both TensorCores
    )(xT, tauT, wpack)


@functools.partial(jax.jit, static_argnames=("dims",))
def _iqn_forward_jit(state, tau_quantile, action, wpack, *, dims):
    """module.forward: [B,Ds],[B,1],[B,Da] -> [B,1]."""
    B = state.shape[0]
    x = jnp.concatenate([state, action], axis=1)            # [B, Din]
    xT, tauT = x.T, tau_quantile.T                           # [Din,B], [1,B]
    M_pad = max(LANE, _rup(B, LANE))
    if M_pad != B:                                           # pad only if needed
        xT = jnp.pad(xT, ((0, 0), (0, M_pad - B)))
        tauT = jnp.pad(tauT, ((0, 0), (0, M_pad - B)), constant_values=0.5)
    out = _launch(xT, tauT, wpack, dims)
    return out[0, :B].reshape(B, 1)


@functools.partial(jax.jit, static_argnames=("dims",))
def _iqn_sampled_Z_jit(state, confidences, action, wpack, *, dims):
    """module.get_sampled_Z: [B,Ds],[K],[B,Da] -> [B,K]."""
    B, K = state.shape[0], confidences.shape[0]
    Din = dims[0] + dims[1]
    M = B * K                                                # row m = b*K + k
    x = jnp.concatenate([state, action], axis=1)             # [B, Din]
    # build transposed, quantile-repeated inputs directly (no repeat+transpose)
    xT = jnp.broadcast_to(x.T[:, :, None], (Din, B, K)).reshape(Din, M)
    tauT = jnp.broadcast_to(confidences.reshape(1, 1, K), (1, B, K)).reshape(1, M)
    M_pad = max(LANE, _rup(M, LANE))
    if M_pad != M:
        xT = jnp.pad(xT, ((0, 0), (0, M_pad - M)))
        tauT = jnp.pad(tauT, ((0, 0), (0, M_pad - M)), constant_values=0.5)
    out = _launch(xT, tauT, wpack, dims)
    return out[0, :M].reshape(B, K)


class PallasIQN:
    """Packs parameters ONCE; exposes jitted forward / get_sampled_Z."""

    def __init__(self, params):
        self.dims = infer_dims(params)
        self.wpack = pack_params(params, self.dims)   # single cached param buffer

    def forward(self, state, tau_quantile, action):
        return _iqn_forward_jit(state, tau_quantile, action, self.wpack,
                                dims=self.dims)

    def get_sampled_Z(self, state, confidences, action):
        return _iqn_sampled_Z_jit(state, confidences, action, self.wpack,
                                  dims=self.dims)


# ------------------------- pure-JAX reference ---------------------------------
def iqn_reference(state, tau_quantile, action, p):
    hp = jax.lax.Precision.HIGHEST
    relu = lambda x: jnp.maximum(x, 0.0)
    h_s = relu(jnp.dot(state, p["Ws"].T, precision=hp) + p["bs"])
    h_a = relu(jnp.dot(action, p["Wa"].T, precision=hp) + p["ba"])
    sa = jnp.concatenate([h_s, h_a], axis=-1)
    e_sa = relu(jnp.dot(sa, p["Wsa"].T, precision=hp) + p["bsa"])
    T = p["Wtau"].shape[1]
    if T > 1:
        i_ = jnp.arange(T, dtype=jnp.float32)
        a = jnp.cos(jnp.float32(math.pi) * i_ * tau_quantile)
    else:
        a = tau_quantile
    e_tau = relu(jnp.dot(a, p["Wtau"].T, precision=hp) + p["btau"])
    h = relu(jnp.dot(e_sa * e_tau, p["Wf"].T, precision=hp) + p["bf"])
    return jnp.dot(h, p["whead"].T, precision=hp) + p["bhead"]


# ------------------------------ main -------------------------------------------
if __name__ == "__main__":
    batch = 8
    dim_state, dim_action = 16, 4
    h_state, h_action, h_f = 32, 32, 32
    embedding_dim, tau_embed_dim = 32, 8
    n_quantiles = 128     # K for the batched-quantile (get_sampled_Z) path

    key = jax.random.PRNGKey(0)
    k_p, k_s, k_a, k_t, k_c = jax.random.split(key, 5)
    params = init_params(k_p, dim_state, dim_action, h_state, h_action,
                         embedding_dim, tau_embed_dim, h_f)

    net = PallasIQN(params)   # parameters packed once, here

    state = jax.random.normal(k_s, (batch, dim_state), jnp.float32)
    action = jax.random.normal(k_a, (batch, dim_action), jnp.float32)
    tau_q = jax.random.uniform(k_t, (batch, 1), jnp.float32)
    confs = jax.random.uniform(k_c, (n_quantiles,), jnp.float32)

    # 1) module.forward path: [B, 1]
    out = jax.block_until_ready(net.forward(state, tau_q, action))
    ref = iqn_reference(state, tau_q, action, params)
    assert out.shape == (batch, 1)
    assert jnp.allclose(out, ref, rtol=1e-4, atol=1e-5), (out, ref)

    # 2) batched-quantile path (get_sampled_Z): [B, K], M = B*K rows per launch
    z = jax.block_until_ready(net.get_sampled_Z(state, confs, action))
    x_rep = jnp.repeat(state, n_quantiles, axis=0)
    a_rep = jnp.repeat(action, n_quantiles, axis=0)
    t_rep = jnp.tile(confs.reshape(1, -1), (batch, 1)).reshape(-1, 1)
    z_ref = iqn_reference(x_rep, t_rep, a_rep, params).reshape(batch, n_quantiles)
    assert z.shape == (batch, n_quantiles)
    assert jnp.allclose(z, z_ref, rtol=1e-4, atol=1e-5), (z, z_ref)

    print("KERNEL_OK")
</pallas_src>

<mosaic_0001>
module attributes {stable_mosaic.version = 11 : i64} {
  func.func @iqn_kernel(%arg0: i32, %arg1: memref<20x128xf32, #tpu.memory_space<vmem>>, %arg2: memref<1x128xf32, #tpu.memory_space<vmem>>, %arg3: memref<160x128xf32, #tpu.memory_space<vmem>>, %arg4: memref<1x128xf32, #tpu.memory_space<vmem>>) attributes {dimension_semantics = [#tpu.dimension_semantics<parallel>], iteration_bounds = array<i64: 1>, scalar_prefetch = 0 : i64, scratch_operands = 0 : i64, tpu.core_type = #tpu.core_type<tc>, window_params = [{transform_indices = @transform_0, window_bounds = array<i64: 20, 128>}, {transform_indices = @transform_1, window_bounds = array<i64: 1, 128>}, {pipeline_mode = #tpu.pipeline_mode<synchronous>, transform_indices = @transform_2, window_bounds = array<i64: 160, 128>}, {transform_indices = @transform_3, window_bounds = array<i64: 1, 128>}]} {
    %c0 = arith.constant 0 : index
    %c0_0 = arith.constant 0 : index
    %0 = vector.load %arg1[%c0, %c0_0] : memref<20x128xf32, #tpu.memory_space<vmem>>, vector<20x128xf32>
    %c0_1 = arith.constant 0 : index
    %c0_2 = arith.constant 0 : index
    %1 = vector.load %arg2[%c0_1, %c0_2] : memref<1x128xf32, #tpu.memory_space<vmem>>, vector<1x128xf32>
    %c0_3 = arith.constant 0 : index
    %c0_4 = arith.constant 0 : index
    %2 = vector.load %arg3[%c0_3, %c0_4] : memref<160x128xf32, #tpu.memory_space<vmem>>, vector<64x20xf32>
    %c0_5 = arith.constant 0 : index
    %c127 = arith.constant 127 : index
    %3 = vector.load %arg3[%c0_5, %c127] : memref<160x128xf32, #tpu.memory_space<vmem>>, vector<64x1xf32>
    %c64 = arith.constant 64 : index
    %c0_6 = arith.constant 0 : index
    %4 = vector.load %arg3[%c64, %c0_6] : memref<160x128xf32, #tpu.memory_space<vmem>>, vector<64x72xf32>
    %c64_7 = arith.constant 64 : index
    %c127_8 = arith.constant 127 : index
    %5 = vector.load %arg3[%c64_7, %c127_8] : memref<160x128xf32, #tpu.memory_space<vmem>>, vector<64x1xf32>
    %c128 = arith.constant 128 : index
    %c0_9 = arith.constant 0 : index
    %6 = vector.load %arg3[%c128, %c0_9] : memref<160x128xf32, #tpu.memory_space<vmem>>, vector<32x32xf32>
    %c128_10 = arith.constant 128 : index
    %c127_11 = arith.constant 127 : index
    %7 = vector.load %arg3[%c128_10, %c127_11] : memref<160x128xf32, #tpu.memory_space<vmem>>, vector<32x1xf32>
    %c128_12 = arith.constant 128 : index
    %c126 = arith.constant 126 : index
    %8 = vector.load %arg3[%c128_12, %c126] : memref<160x128xf32, #tpu.memory_space<vmem>>, vector<32x1xf32>
    %c128_13 = arith.constant 128 : index
    %c125 = arith.constant 125 : index
    %9 = vector.load %arg3[%c128_13, %c125] : memref<160x128xf32, #tpu.memory_space<vmem>>, vector<1x1xf32>
    %cst = arith.constant dense<0.000000e+00> : vector<64x128xf32>
    %10 = tpu.matmul %2, %0, %cst {dimension_numbers = #tpu.dot_dimension_numbers<[1], [0], [0], [1], [0, 0, 1, 1], [], []>} : vector<64x20xf32>, vector<20x128xf32>, vector<64x128xf32> -> vector<64x128xf32>
    %11 = vector.broadcast %3 : vector<64x1xf32> to vector<64x128xf32>
    %12 = arith.addf %10, %11 : vector<64x128xf32>
    %cst_14 = arith.constant 0.000000e+00 : f32
    %13 = vector.broadcast %cst_14 : f32 to vector<64x128xf32>
    %14 = arith.maximumf %12, %13 : vector<64x128xf32>
    %15 = tpu.iota {dimensions = array<i32: 0>} : vector<8x1xi32>
    %16 = arith.sitofp %15 : vector<8x1xi32> to vector<8x1xf32>
    %cst_15 = arith.constant 3.14159274 : f32
    %17 = vector.broadcast %cst_15 : f32 to vector<1x128xf32>
    %18 = arith.mulf %17, %1 : vector<1x128xf32>
    %19 = vector.broadcast %16 : vector<8x1xf32> to vector<8x128xf32>
    %20 = vector.broadcast %18 : vector<1x128xf32> to vector<8x128xf32>
    %21 = arith.mulf %19, %20 : vector<8x128xf32>
    %22 = math.cos %21 : vector<8x128xf32>
    %23 = tpu.concatenate %14, %22 in 0 : vector<64x128xf32>, vector<8x128xf32> -> vector<72x128xf32>
    %cst_16 = arith.constant dense<0.000000e+00> : vector<64x128xf32>
    %24 = tpu.matmul %4, %23, %cst_16 {dimension_numbers = #tpu.dot_dimension_numbers<[1], [0], [0], [1], [0, 0, 1, 1], [], []>} : vector<64x72xf32>, vector<72x128xf32>, vector<64x128xf32> -> vector<64x128xf32>
    %25 = vector.broadcast %5 : vector<64x1xf32> to vector<64x128xf32>
    %26 = arith.addf %24, %25 : vector<64x128xf32>
    %cst_17 = arith.constant 0.000000e+00 : f32
    %27 = vector.broadcast %cst_17 : f32 to vector<64x128xf32>
    %28 = arith.maximumf %26, %27 : vector<64x128xf32>
    %29 = vector.extract_strided_slice %28 {offsets = [0, 0], sizes = [32, 128], strides = [1, 1]} : vector<64x128xf32> to vector<32x128xf32>
    %30 = vector.extract_strided_slice %28 {offsets = [32, 0], sizes = [32, 128], strides = [1, 1]} : vector<64x128xf32> to vector<32x128xf32>
    %31 = arith.mulf %29, %30 : vector<32x128xf32>
    %cst_18 = arith.constant dense<0.000000e+00> : vector<32x128xf32>
    %32 = tpu.matmul %6, %31, %cst_18 {dimension_numbers = #tpu.dot_dimension_numbers<[1], [0], [0], [1], [0, 0, 1, 1], [], []>} : vector<32x32xf32>, vector<32x128xf32>, vector<32x128xf32> -> vector<32x128xf32>
    %33 = vector.broadcast %7 : vector<32x1xf32> to vector<32x128xf32>
    %34 = arith.addf %32, %33 : vector<32x128xf32>
    %cst_19 = arith.constant 0.000000e+00 : f32
    %35 = vector.broadcast %cst_19 : f32 to vector<32x128xf32>
    %36 = arith.maximumf %34, %35 : vector<32x128xf32>
    %37 = vector.broadcast %8 : vector<32x1xf32> to vector<32x128xf32>
    %38 = arith.mulf %36, %37 : vector<32x128xf32>
    %cst_20 = arith.constant dense<0.000000e+00> : vector<128xf32>
    %39 = vector.multi_reduction <add>, %38, %cst_20 [0] : vector<32x128xf32> to vector<128xf32>
    %40 = vector.shape_cast %39 : vector<128xf32> to vector<1x128xf32>
    %41 = vector.broadcast %9 : vector<1x1xf32> to vector<1x128xf32>
    %42 = arith.addf %40, %41 : vector<1x128xf32>
    %c0_21 = arith.constant 0 : index
    %c0_22 = arith.constant 0 : index
    %43 = vector.load %arg4[%c0_21, %c0_22] : memref<1x128xf32, #tpu.memory_space<vmem>>, vector<1x128xf32>
    tpu.vector_store %arg4[%c0_21, %c0_22], %42 {strides = array<i32>} : memref<1x128xf32, #tpu.memory_space<vmem>>, vector<1x128xf32>,
    return
  }
  func.func @transform_0(%arg0: i32) -> (i32, i32) {
    %c0_i32 = arith.constant 0 : i32
    %c0_i32_0 = arith.constant 0 : i32
    return %c0_i32, %arg0 : i32, i32
  }
  func.func @transform_1(%arg0: i32) -> (i32, i32) {
    %c0_i32 = arith.constant 0 : i32
    %c0_i32_0 = arith.constant 0 : i32
    return %c0_i32, %arg0 : i32, i32
  }
  func.func @transform_2(%arg0: i32) -> (i32, i32) {
    %c0_i32 = arith.constant 0 : i32
    %c0_i32_0 = arith.constant 0 : i32
    %c0_i32_1 = arith.constant 0 : i32
    return %c0_i32, %c0_i32_0 : i32, i32
  }
  func.func @transform_3(%arg0: i32) -> (i32, i32) {
    %c0_i32 = arith.constant 0 : i32
    %c0_i32_0 = arith.constant 0 : i32
    return %c0_i32, %arg0 : i32, i32
  }
}

</mosaic_0001>

<bundles_post_ra>
// kernel: _iqn_forward_jit.1
= control target key start
LH: loop header
LB: loop body
LE: loop exit
PB: predicated region body
PF: predicated region fallthrough
CT: control target
= control target key end

     0   :  { %8 = vsyncpa [#allocation3], 0  ;;  %s623_s15 = smov [#allocation2]   ;;  %s624_s17 = smov 128   ;;  %s801_s0 = inlined_call_operand.vmem [shape: f32[20,128], index: 0, kind: input, shape index: {}]   ;;  %s802_s1 = inlined_call_operand.vmem [shape: f32[1,128], index: 1, kind: input, shape index: {}]   ;;  %s803_s2 = inlined_call_operand.hbm [shape: f32[160,128], index: 2, kind: input, shape index: {}]   ;;  %s804_s3 = inlined_call_operand.vmem [shape: f32[1,128], index: 3, kind: output, shape index: {}]  }
   0x1   :  { %s17_s14 = sshll.u32 %s803_s2, 4  ;;  %s19_s16 = sshll.u32 %s623_s15, 4  ;;  %s18_s14 = int_to_ptr.hbm [resolvable:$true] %s17_s14  ;;  %s20_s16 = int_to_ptr.vmem [resolvable:$true] %s19_s16 }
   0x2   :  { %s625_s18 = smov 8  }
   0x3   :  { %25 = dma.hbm_to_vmem [thread:$0]  %s18_s14, 2560, %s20_s16, [#allocation3], %s624_s17, %s624_s17, %s625_s18  }
   0x4   :  { %621 = dma.done.wait [#allocation3], 2560  }
   0x5   :  { %622 = vsyncadd [#allocation3], 4294964736  ;;  %v626_v0 = vmov 127   ;;  %vm112_vm0 = vcmask 1043456   ;;  %v41_v1 = vld [vmem:[#allocation2 + $0x38] sm:$0xff]  ;;  %v659_v2 = vld [vmem:[#allocation2 + $0x28] sm:$0xff]  ;;  %v165_v15 = vlaneseq }
   0x6   :  { %590 = vset.pattern.permute.xlu1 %v626_v0  ;;  %589 = vset.pattern.permute.xlu0 %v626_v0  ;;  %v32_v3 = vld [vmem:[%s801_s0 + $0x10] sm:$0xf]  ;;  %v31_v4 = vld [vmem:[%s801_s0 + $0x8] sm:$0xff]  ;;  %v30_v5 = vld [vmem:[%s801_s0] sm:$0xff]  ;;  %vm95_vm1 = vcmask 162816  }
   0x7   :  { %591 = vset.pattern.permute.xlu2 %v626_v0  ;;  %92 = vperm.xlu0 %589, %v41_v1   ;;  %v34_v6 = vld [vmem:[#allocation2] sm:$0xff]  ;;  %v37_v7 = vld [vmem:[#allocation2 + $0x18] sm:$0xff]  ;;  %v40_v8 = vld [vmem:[#allocation2 + $0x30] sm:$0xff]  ;;  %v166_v18 = vshrl.u32 %v165_v15, 7  ;;  %v627_v39 = vmov 2102212464  }
   0x8   :  { %82 = vperm.xlu1 %590, %v659_v2   ;;  %540 = vmatpush.msk.msra.mxu0 %vm112_vm0, %v32_v3  ;;  %v38_v9 = vld [vmem:[#allocation2 + $0x20] sm:$0xff]  ;;  %v35_v10 = vld [vmem:[#allocation2 + $0x8] sm:$0xff]  ;;  %v36_v11 = vld [vmem:[#allocation2 + $0x10] sm:$0xff]  ;;  %v628_v43 = vmov 683565275  }
   0x9   :  { %564 = vmatpush.msk.msra.mxu2 %vm112_vm0, %v32_v3  ;;  %72 = vperm.xlu2 %591, %v37_v7   ;;  %v675_v12 = vld [vmem:[#allocation2 + $0x58] sm:$0xff]  ;;  %v680_v14 = vld [vmem:[#allocation2 + $0x50] sm:$0xff]  ;;  %v33_v17 = vld [vmem:[%s802_s1] sm:$0x1]  ;;  %v167_v20 = vcvt.s32.f32 %v166_v18  ;;  %v629_v45 = vmov 2475754826  }
   0xa   :  { %130 = vmatpush.msra.mxu0 %v31_v4  ;;  %v678_v13 = vld [vmem:[#allocation2 + $0x78] sm:$0xff]  ;;  %v685_v16 = vld [vmem:[#allocation2 + $0x70] sm:$0xff]  ;;  %v168_v19 = vmul.f32 3.1415927, %v33_v17  ;;  %v691_v22 = vld [vmem:[#allocation2 + $0x48] sm:$0xff] }
   0xb   :  { %565 = vmatpush.msra.mxu2 %v31_v4  ;;  %v693_v23 = vld [vmem:[#allocation2 + $0x68] sm:$0xff]  ;;  %v701_v26 = vld [vmem:[#allocation2 + $0x40] sm:$0xff]  ;;  %v713_v35 = vld [vmem:[#allocation2 + $0x90] sm:$0xff]  ;;  %v630_v48 = vmov 2131351028  }
   0xc   :  { %131 = vmatpush.msra.mxu0 %v30_v5  ;;  %v170_v21 = vperm.slane %v168_v19, 0  ;;  %v704_v29 = vld [vmem:[#allocation2 + $0x60] sm:$0xff]  ;;  %v711_v32 = vld [vmem:[#allocation2 + $0x88] sm:$0xff]  ;;  %v715_v36 = vld [vmem:[#allocation2 + $0x98] sm:$0xff]  ;;  %v631_v54 = vmov 920167782  }
   0xd   :  { %566 = vmatpush.msra.mxu2 %v30_v5  ;;  %541 = vmatmul.msk.f32.vlgmr.msra.gmra.mxu0 %vm95_vm1, %v34_v6  ;;  %v706_v30 = vld [vmem:[#allocation2 + $0x80] sm:$0xff]  ;;  %v632_v58 = vmov 1326507024  }
   0xe   :  { %547 = vmatmul.msk.f32.vlgmr.msra.gmra.mxu2 %vm95_vm1, %v40_v8  ;;  %v696_v24 = vmul.f32 %v170_v21, %v167_v20 }
   0xf   :  { %87 = vperm.xlu0 %589, %v40_v8  }
  0x10   :  { %77 = vperm.xlu1 %590, %v38_v9   ;;  %v176_v25 = vand.u32 2139095040, %v696_v24  ;;  %v173_v38 = vand.u32 2147483647, %v696_v24  ;;  %vm175_vm14 = vcmp.lt.s32.totalorder %v696_v24, 0 }
  0x11   :  { %67 = vperm.xlu2 %591, %v36_v11  }
  0x12   :  { %v177_v27 = vshrl.u32 %v176_v25, 23  ;;  %v180_v41 = vand.u32 8388607, %v173_v38  ;;  %vm772_vm15 = vcmp.le.f32.partialorder %v173_v38, 0.7853982 }
  0x14   :  { %v549_v28 = vadd.s32 4294967169, %v177_v27  ;;  %v181_v51 = vor.u32 8388608, %v180_v41 }
  0x15   :  { %542 = vmatmul.msk.f32.gmra.mxu0 %vm95_vm1, %v35_v10 }
  0x16   :  { %548 = vmatmul.msk.f32.gmra.mxu2 %vm95_vm1, %v41_v1  ;;  %v183_v31 = vadd.s32 1, %v549_v28  ;;  %v221_v0 = vshll.u32 %v181_v51, 8 }
  0x17   :  { %62 = vperm.xlu0 %589, %v35_v10  }
  0x18   :  { %57 = vperm.xlu1 %590, %v34_v6   ;;  %vm184_vm2 = vcmp.gt.s32.totalorder %v183_v31, 0  ;;  %v222_v5 = vand.u32 65535, %v221_v0  ;;  %v223_v8 = vshrl.u32 %v221_v0, 16 }
  0x19   :  { %344 = vperm.xlu2 %591, %v675_v12   ;;  %v185_v33 = vsel %vm184_vm2, %v183_v31, 0 }
  0x1a   :  { %v187_v34 = vand.u32 31, %v185_v33  ;;  %v725_v42 = vshrl.u32 %v185_v33, 5 }
  0x1c   :  { %v718_v37 = vsub.s32 32, %v187_v34  ;;  %v199_v40 = vshll.u32 %v627_v39, %v187_v34  ;;  %v190_v44 = vshll.u32 %v628_v43, %v187_v34  ;;  %v193_v47 = vshll.u32 %v629_v45, %v187_v34 }
  0x1d   :  { %543 = vmatmul.msk.f32.gmra.mxu0 %vm95_vm1, %v36_v11  ;;  %v196_v50 = vshll.u32 %v630_v48, %v187_v34  ;;  %v202_v57 = vshll.u32 %v631_v54, %v187_v34  ;;  %vm205_vm3 = vcmp.lt.s32.totalorder %v725_v42, 1  ;;  %vm206_vm4 = vcmp.lt.s32.totalorder %v725_v42, 2 }
  0x1e   :  { %v191_v46 = vshrl.u32 %v629_v45, %v718_v37  ;;  %v194_v49 = vshrl.u32 %v630_v48, %v718_v37  ;;  %v197_v53 = vshrl.u32 %v627_v39, %v718_v37  ;;  %v200_v55 = vshrl.u32 %v631_v54, %v718_v37 }
  0x1f   :  { %364 = vperm.xlu0 %589, %v678_v13   ;;  %v203_v59 = vshrl.u32 %v632_v58, %v718_v37  ;;  %vm207_vm5 = vcmp.lt.s32.totalorder %v725_v42, 3  ;;  %vm208_vm6 = vcmp.lt.s32.totalorder %v725_v42, 4  ;;  %v633_v45 = vmov 0  }
  0x20   :  { %339 = vperm.xlu1 %590, %v680_v14   ;;  %v732_v52 = vor.u32 %v191_v46, %v190_v44  ;;  %v195_v56 = vor.u32 %v194_v49, %v193_v47  ;;  %v198_v60 = vor.u32 %v197_v53, %v196_v50  ;;  %v201_v61 = vor.u32 %v200_v55, %v199_v40 }
  0x21   :  { %359 = vperm.xlu2 %591, %v685_v16   ;;  %v204_v62 = vor.u32 %v203_v59, %v202_v57  ;;  %v189_v54 = vshrl.u32 %v628_v43, %v718_v37 }
  0x22   :  { %v213_v63 = vsel %vm205_vm3, %v732_v52, %v195_v56  ;;  %v214_v1 = vsel %vm208_vm6, %v201_v61, 920167782  ;;  %v210_v59 = vsel %vm208_vm6, %v198_v60, 2102212464 }
  0x23   :  { %v215_v3 = vsel %vm207_vm5, %v198_v60, %v214_v1  ;;  %v218_v4 = vsel %vm208_vm6, %v204_v62, 1326507024  ;;  %v211_v1 = vsel %vm207_vm5, %v195_v56, %v210_v59 }
  0x24   :  { %v216_v6 = vsel %vm206_vm4, %v213_v63, %v215_v3  ;;  %v209_v63 = vsel %vm205_vm3, %v189_v54, %v732_v52 }
  0x25   :  { %544 = vmatmul.msk.f32.gmra.mxu0 %vm95_vm1, %v37_v7  ;;  %v219_v7 = vsel %vm207_vm5, %v201_v61, %v218_v4  ;;  %v246_v10 = vand.u32 65535, %v216_v6  ;;  %v247_v11 = vshrl.u32 %v216_v6, 16  ;;  %v212_v3 = vsel %vm206_vm4, %v209_v63, %v211_v1 }
  0x26   :  { %v266_v6 = vmul.u32 %v221_v0, %v212_v3  ;;  %vm457_vm5 = vcmask 261120  }
  0x27   :  { %334 = vperm.xlu0 %589, %v691_v22   ;;  %v248_v18 = vmul.u32 %v246_v10, %v222_v5  ;;  %v249_v19 = vmul.u32 %v247_v11, %v222_v5  ;;  %v250_v20 = vmul.u32 %v246_v10, %v223_v8  ;;  %v251_v28 = vmul.u32 %v247_v11, %v223_v8 }
  0x28   :  { %354 = vperm.xlu1 %590, %v693_v23  }
  0x29   :  { %329 = vperm.xlu2 %591, %v701_v26   ;;  %v252_v31 = vshll.u32 %v249_v19, 16  ;;  %v254_v33 = vshll.u32 %v250_v20, 16  ;;  %v253_v48 = vshrl.u32 %v249_v19, 16  ;;  %v255_v57 = vshrl.u32 %v250_v20, 16 }
  0x2b   :  { %vm256_vm7 = vc.u32 %v248_v18, %v252_v31  ;;  %v258_v41 = vadd.s32 %v252_v31, %v248_v18 }
  0x2c   :  { %v257_v46 = vsel %vm256_vm7, 1, %v633_v45 }
  0x2d   :  { %545 = vmatmul.msk.f32.gmra.mxu0 %vm95_vm1, %v38_v9  ;;  %v259_v49 = vadd.s32 %v257_v46, %v251_v28  ;;  %vm260_vm9 = vc.u32 %v258_v41, %v254_v33  ;;  %v262_v43 = vadd.s32 %v258_v41, %v254_v33 }
  0x2e   :  { %v261_v53 = vsel %vm260_vm9, 1, %v633_v45 }
  0x2f   :  { %349 = vperm.xlu0 %589, %v704_v29   ;;  %v263_v58 = vadd.s32 %v261_v53, %v259_v49 }
  0x30   :  { %439 = vperm.xlu1 %590, %v706_v30  }
  0x31   :  { %444 = vperm.xlu2 %591, %v711_v32  }
  0x35   :  { %546 = vmatmul.msk.f32.gmra.mxu0 %vm95_vm1, %v659_v2  ;;  %v217_v2 = vsel %vm205_vm3, %v195_v56, %v198_v60  ;;  %vm316_vm3 = vweird.f32 %v696_v24 }
  0x36   :  { %v220_v9 = vsel %vm206_vm4, %v217_v2, %v219_v7  ;;  %v264_v2 = vadd.s32 %v263_v58, %v253_v48  ;;  %vm367_vm4 = vcmask 588800  }
  0x37   :  { %449 = vperm.xlu0 %589, %v713_v35   ;;  %v224_v15 = vand.u32 65535, %v220_v9  ;;  %v225_v17 = vshrl.u32 %v220_v9, 16 }
  0x38   :  { %454 = vperm.xlu1 %590, %v715_v36   ;;  %v265_v4 = vadd.s32 %v264_v2, %v255_v57 }
  0x39   :  { %v226_v21 = vmul.u32 %v224_v15, %v222_v5  ;;  %v227_v25 = vmul.u32 %v225_v17, %v222_v5  ;;  %v228_v27 = vmul.u32 %v224_v15, %v223_v8  ;;  %v229_v34 = vmul.u32 %v225_v17, %v223_v8 }
  0x3a   :  { %v269_v7 = vadd.s32 1, %v265_v4 }
  0x3b   :  { %v230_v39 = vshll.u32 %v227_v25, 16  ;;  %v232_v40 = vshll.u32 %v228_v27, 16  ;;  %v231_v50 = vshrl.u32 %v227_v25, 16  ;;  %v233_v61 = vshrl.u32 %v228_v27, 16 }
  0x3d   :  { %vm234_vm8 = vc.u32 %v226_v21, %v230_v39  ;;  %v236_v44 = vadd.s32 %v230_v39, %v226_v21 }
  0x3e   :  { %v235_v47 = vsel %vm234_vm8, 1, %v633_v45 }
  0x3f   :  { %v237_v51 = vadd.s32 %v235_v47, %v229_v34  ;;  %vm238_vm10 = vc.u32 %v236_v44, %v232_v40 }
  0x40   :  { %v239_v55 = vsel %vm238_vm10, 1, %v633_v45 }
  0x41   :  { %v241_v62 = vadd.s32 %v239_v55, %v237_v51 }
  0x43   :  { %v242_v37 = vadd.s32 %v241_v62, %v231_v50 }
  0x45   :  { %v243_v5 = vadd.s32 %v242_v37, %v233_v61 }
  0x47   :  { %vm268_vm11 = vc.u32 %v243_v5, %v262_v43  ;;  %v267_v42 = vadd.s32 %v262_v43, %v243_v5 }
  0x48   :  { %v270_v60 = vsel %vm268_vm11, %v269_v7, %v265_v4 }
  0x49   :  { %v271_v8 = vadd.s32 %v270_v60, %v266_v6 }
  0x4b   :  { %v272_v9 = vadd.s32 536870912, %v271_v8 }
  0x4d   :  { %v273_v10 = vshrl.u32 %v272_v9, 30 }
  0x4f   :  { %v274_v11 = vshll.u32 %v273_v10, 30  ;;  %v297_v55 = vsub.s32 4, %v273_v10 }
  0x51   :  { %v275_v52 = vsub.s32 %v271_v8, %v274_v11  ;;  %v298_v38 = vsel %vm175_vm14, %v297_v55, %v273_v10 }
  0x52   :  { %v300_v62 = vsel %vm772_vm15, 0, %v298_v38 }
  0x53   :  { %vm276_vm12 = vcmp.lt.s32.totalorder %v275_v52, 0  ;;  %v277_v15 = vsub.s32 0, %v275_v52  ;;  %v317_v2 = vand.u32 3, %v300_v62 }
  0x55   :  { %v278_v56 = vsel %vm276_vm12, %v277_v15, %v275_v52  ;;  %vm322_vm0 = vcmp.eq.s32.totalorder %v317_v2, 2  ;;  %vm319_vm1 = vcmp.eq.s32.totalorder %v317_v2, 0  ;;  %vm318_vm2 = vcmp.lt.s32.totalorder %v317_v2, 2 }
  0x56   :  { %v279_v17 = vclz %v278_v56 }
  0x58   :  { %v550_v18 = vadd.s32 4294967294, %v279_v17 }
  0x5a   :  { %vm551_vm13 = vcmp.lt.s32.totalorder %v550_v18, 0 }
  0x5b   :  { %v282_v19 = vsel %vm551_vm13, 0, %v550_v18 }
  0x5c   :  { %v283_v20 = vsub.s32 32, %v282_v19  ;;  %v287_v21 = vsub.s32 4294967266, %v282_v19  ;;  %v284_v25 = vshll.u32 %v275_v52, %v282_v19 }
  0x5e   :  { %v285_v0 = vshrl.u32 %v267_v42, %v283_v20  ;;  %v288_v27 = vadd.s32 127, %v287_v21 }
  0x60   :  { %v286_v28 = vor.u32 %v285_v0, %v284_v25  ;;  %v289_v31 = vshll.u32 %v288_v27, 23 }
  0x62   :  { %v290_v33 = vor.u32 4788187, %v289_v31  ;;  %v293_v34 = vcvt.s32.f32 %v286_v28 }
  0x63   :  { %v73_v21 = vpop.permute.xlu2 %72 }
  0x64   :  { %v291_v39 = vand.u32 2147483647, %v290_v33 }
  0x66   :  { %v294_v40 = vmul.f32 %v293_v34, %v291_v39 }
  0x68   :  { %v295_v44 = vxor.u32 2147483648, %v294_v40 }
  0x6a   :  { %v296_v45 = vsel %vm175_vm14, %v295_v44, %v294_v40 }
  0x6b   :  { %v299_v46 = vsel %vm772_vm15, %v696_v24, %v296_v45  ;;  %v68_v34 = vpop.permute.xlu2 %67 }
  0x6c   :  { %v301_v47 = vmul.f32 %v299_v46, %v299_v46 }
  0x6e   :  { %v302_v48 = vmul.f32 -0.001358992, %v301_v47  ;;  %v309_v49 = vmul.f32 -0.00019511016, %v301_v47 }
  0x70   :  { %v303_v50 = vadd.f32 0.041655596, %v302_v48  ;;  %v310_v51 = vadd.f32 0.008332121, %v309_v49 }
  0x72   :  { %v304_v53 = vmul.f32 %v303_v50, %v301_v47  ;;  %v311_v54 = vmul.f32 %v310_v51, %v301_v47 }
  0x73   :  { %v345_v55 = vpop.permute.xlu2 %344 }
  0x74   :  { %v305_v57 = vadd.f32 -0.4999988, %v304_v53  ;;  %v312_v58 = vadd.f32 -0.16666654, %v311_v54 }
  0x76   :  { %v306_v59 = vmul.f32 %v305_v57, %v301_v47  ;;  %v313_v61 = vmul.f32 %v312_v58, %v301_v47 }
  0x78   :  { %v307_v63 = vadd.f32 1.0, %v306_v59  ;;  %v314_v1 = vadd.f32 1.0, %v313_v61 }
  0x79   :  { %v93_v8 = vpop.permute.xlu0 %92 }
  0x7a   :  { %v315_v3 = vmul.f32 %v314_v1, %v299_v46  ;;  %v323_v37 = vxor.u32 2147483648, %v307_v63  ;;  %v83_v19 = vpop.permute.xlu1 %82 }
  0x7b   :  { %v360_v38 = vpop.permute.xlu2 %359 }
  0x7c   :  { %v320_v43 = vxor.u32 2147483648, %v315_v3  ;;  %v324_v4 = vsel %vm322_vm0, %v323_v37, %v315_v3 }
  0x7e   :  { %v321_v5 = vsel %vm319_vm1, %v307_v63, %v320_v43 }
  0x7f   :  { %v325_v6 = vsel %vm318_vm2, %v321_v5, %v324_v4 }
  0x80   :  { %v326_v7 = vsel %vm316_vm3, nan, %v325_v6 }
  0x81   :  { %391 = vmatpush.msra.mxu1 %v326_v7  ;;  %567 = vmatpush.msra.mxu3 %v326_v7  ;;  %v88_v11 = vpop.permute.xlu0 %87 }
  0x82   :  { %v78_v25 = vpop.permute.xlu1 %77 }
  0x83   :  { %v330_v5 = vpop.permute.xlu2 %329 }
  0x89   :  { %v63_v41 = vpop.permute.xlu0 %62 }
  0x8a   :  { %v133_v60 = vpop.f32.mrf.mxu0  ;;  %v58_v44 = vpop.permute.xlu1 %57 }
  0x8b   :  { %v134_v47 = vadd.f32 %v133_v60, %v58_v44 }
  0x8d   :  { %v157_v50 = vmax.f32 %v134_v47, 0.0 }
  0x91   :  { %v151_v9 = vpop.f32.mrf.mxu2  ;;  %v365_v57 = vpop.permute.xlu0 %364 }
  0x92   :  { %v136_v10 = vpop.f32.mrf.mxu0  ;;  %v152_v52 = vadd.f32 %v151_v9, %v88_v11  ;;  %v340_v58 = vpop.permute.xlu1 %339 }
  0x93   :  { %v137_v45 = vadd.f32 %v136_v10, %v63_v41 }
  0x94   :  { %v163_v18 = vmax.f32 %v152_v52, 0.0  ;;  %v634_v52 = vmov 126  }
  0x95   :  { %v158_v49 = vmax.f32 %v137_v45, 0.0  ;;  %593 = vset.pattern.permute.xlu0 %v634_v52  ;;  %594 = vset.pattern.permute.xlu1 %v634_v52 }
  0x96   :  { %504 = vperm.xlu0 %593, %v711_v32   ;;  %508 = vperm.xlu1 %594, %v713_v35  }
  0x97   :  { %592 = vset.pattern.permute.xlu2 %v634_v52 }
  0x98   :  { %500 = vperm.xlu2 %592, %v706_v30  }
  0x99   :  { %v154_v15 = vpop.f32.mrf.mxu2 }
  0x9a   :  { %v155_v56 = vadd.f32 %v154_v15, %v93_v8  ;;  %v139_v17 = vpop.f32.mrf.mxu0 }
  0x9b   :  { %v140_v39 = vadd.f32 %v139_v17, %v68_v34 }
  0x9c   :  { %v164_v42 = vmax.f32 %v155_v56, 0.0 }
  0x9d   :  { %v159_v48 = vmax.f32 %v140_v39, 0.0 }
  0x9e   :  { %392 = vmatpush.msra.mxu1 %v164_v42  ;;  %568 = vmatpush.msra.mxu3 %v164_v42  ;;  %v635_v42 = vmov 125  }
  0x9f   :  { %596 = vset.pattern.permute.xlu0 %v635_v42  ;;  %595 = vset.pattern.permute.xlu1 %v635_v42 }
  0xa0   :  { %393 = vmatpush.msra.mxu1 %v163_v18  ;;  %569 = vmatpush.msra.mxu3 %v163_v18  ;;  %v54_v18 = vld [vmem:[#allocation2 + $0x80] sm:$0x1] }
  0xa1   :  { %530 = vperm.xlu1 %595, %v54_v18   ;;  %512 = vperm.xlu2 %592, %v715_v36  }
  0xa2   :  { %v142_v24 = vpop.f32.mrf.mxu0 }
  0xa3   :  { %v143_v31 = vadd.f32 %v142_v24, %v73_v21 }
  0xa5   :  { %v160_v46 = vmax.f32 %v143_v31, 0.0 }
  0xaa   :  { %v145_v20 = vpop.f32.mrf.mxu0 }
  0xab   :  { %v146_v27 = vadd.f32 %v145_v20, %v78_v25  ;;  %v445_v25 = vpop.permute.xlu2 %444 }
  0xad   :  { %v161_v40 = vmax.f32 %v146_v27, 0.0 }
  0xb2   :  { %v148_v0 = vpop.f32.mrf.mxu0 }
  0xb3   :  { %v149_v28 = vadd.f32 %v148_v0, %v83_v19 }
  0xb5   :  { %v162_v33 = vmax.f32 %v149_v28, 0.0 }
  0xb7   :  { %394 = vmatpush.msra.mxu1 %v162_v33  ;;  %570 = vmatpush.msra.mxu3 %v162_v33 }
  0xb9   :  { %395 = vmatpush.msra.mxu1 %v161_v40  ;;  %571 = vmatpush.msra.mxu3 %v161_v40 }
  0xbb   :  { %396 = vmatpush.msra.mxu1 %v160_v46  ;;  %572 = vmatpush.msra.mxu3 %v160_v46 }
  0xbd   :  { %397 = vmatpush.msra.mxu1 %v159_v48  ;;  %573 = vmatpush.msra.mxu3 %v159_v48 }
  0xbf   :  { %398 = vmatpush.msra.mxu1 %v158_v49  ;;  %574 = vmatpush.msra.mxu3 %v158_v49 }
  0xc1   :  { %399 = vmatpush.msra.mxu1 %v157_v50  ;;  %575 = vmatpush.msra.mxu3 %v157_v50 }
  0xc2   :  { %552 = vmatmul.msk.f32.vlgmr.msra.gmra.mxu1 %vm367_vm4, %v701_v26  ;;  %557 = vmatmul.msk.f32.vlgmr.msra.gmra.mxu3 %vm367_vm4, %v693_v23 }
  0xca   :  { %553 = vmatmul.msk.f32.gmra.mxu1 %vm367_vm4, %v691_v22  ;;  %558 = vmatmul.msk.f32.gmra.mxu3 %vm367_vm4, %v685_v16  ;;  %v335_v22 = vpop.permute.xlu0 %334 }
  0xd2   :  { %554 = vmatmul.msk.f32.gmra.mxu1 %vm367_vm4, %v680_v14  ;;  %559 = vmatmul.msk.f32.gmra.mxu3 %vm367_vm4, %v678_v13  ;;  %v350_v8 = vpop.permute.xlu0 %349 }
  0xda   :  { %555 = vmatmul.msk.f32.gmra.mxu1 %vm367_vm4, %v675_v12  ;;  %v355_v12 = vpop.permute.xlu1 %354  ;;  %v450_v21 = vpop.permute.xlu0 %449 }
  0xe2   :  { %556 = vmatmul.msk.f32.gmra.mxu1 %vm367_vm4, %v704_v29  ;;  %v440_v19 = vpop.permute.xlu1 %439 }
  0xea   :  { %v455_v0 = vpop.permute.xlu1 %454 }
  0xf2   :  { %v501_v34 = vpop.permute.xlu2 %500 }
  0xfb   :  { %v513_v49 = vpop.permute.xlu2 %512 }
 0x108   :  { %v505_v39 = vpop.permute.xlu0 %504 }
 0x13f   :  { %v401_v51 = vpop.f32.mrf.mxu1 }
 0x140   :  { %v402_v6 = vadd.f32 %v401_v51, %v330_v5 }
 0x142   :  { %v425_v15 = vmax.f32 %v402_v6, 0.0 }
 0x145   :  { %v416_v53 = vpop.f32.mrf.mxu3 }
 0x146   :  { %v417_v1 = vadd.f32 %v416_v53, %v355_v12 }
 0x147   :  { %v404_v54 = vpop.f32.mrf.mxu1 }
 0x148   :  { %v405_v62 = vadd.f32 %v404_v54, %v335_v22  ;;  %v430_v7 = vmax.f32 %v417_v1, 0.0 }
 0x14a   :  { %v426_v37 = vmax.f32 %v405_v62, 0.0 }
 0x14c   :  { %v434_v11 = vmul.f32 %v430_v7, %v426_v37 }
 0x14d   :  { %v419_v26 = vpop.f32.mrf.mxu3 }
 0x14e   :  { %v420_v13 = vadd.f32 %v419_v26, %v360_v38 }
 0x14f   :  { %v407_v23 = vpop.f32.mrf.mxu1 }
 0x150   :  { %v408_v16 = vadd.f32 %v407_v23, %v340_v58  ;;  %v431_v43 = vmax.f32 %v420_v13, 0.0 }
 0x152   :  { %v427_v29 = vmax.f32 %v408_v16, 0.0 }
 0x154   :  { %v435_v60 = vmul.f32 %v431_v43, %v427_v29 }
 0x155   :  { %v422_v59 = vpop.f32.mrf.mxu3 }
 0x156   :  { %v423_v61 = vadd.f32 %v422_v59, %v365_v57 }
 0x157   :  { %v410_v14 = vpop.f32.mrf.mxu1 }
 0x158   :  { %v411_v63 = vadd.f32 %v410_v14, %v345_v55  ;;  %v432_v2 = vmax.f32 %v423_v61, 0.0 }
 0x15a   :  { %v428_v3 = vmax.f32 %v411_v63, 0.0 }
 0x15c   :  { %v436_v4 = vmul.f32 %v432_v2, %v428_v3 }
 0x15e   :  { %478 = vmatpush.msrb.mxu2 %v436_v4 }
 0x15f   :  { %v413_v9 = vpop.f32.mrf.mxu1 }
 0x160   :  { %v414_v10 = vadd.f32 %v413_v9, %v350_v8  ;;  %479 = vmatpush.msrb.mxu2 %v435_v60 }
 0x162   :  { %v429_v56 = vmax.f32 %v414_v10, 0.0  ;;  %480 = vmatpush.msrb.mxu2 %v434_v11 }
 0x164   :  { %v433_v17 = vmul.f32 %v429_v56, %v425_v15 }
 0x166   :  { %481 = vmatpush.msrb.mxu2 %v433_v17 }
 0x167   :  { %560 = vmatmul.msk.f32.vlgmr.msrb.gmra.mxu2 %vm457_vm5, %v706_v30 }
 0x16f   :  { %561 = vmatmul.msk.f32.gmra.mxu2 %vm457_vm5, %v711_v32  ;;  %v509_v32 = vpop.permute.xlu1 %508 }
 0x177   :  { %562 = vmatmul.msk.f32.gmra.mxu2 %vm457_vm5, %v713_v35  ;;  %v531_v23 = vpop.permute.xlu1 %530 }
 0x17f   :  { %563 = vmatmul.msk.f32.gmra.mxu2 %vm457_vm5, %v715_v36 }
 0x1ea   :  { %v483_v24 = vpop.f32.mrf.mxu2 }
 0x1eb   :  { %v484_v28 = vadd.f32 %v483_v24, %v440_v19 }
 0x1ed   :  { %v495_v40 = vmax.f32 %v484_v28, 0.0 }
 0x1ef   :  { %v515_v45 = vmul.f32 %v501_v34, %v495_v40 }
 0x1f2   :  { %v486_v20 = vpop.f32.mrf.mxu2 }
 0x1f3   :  { %v487_v30 = vadd.f32 %v486_v20, %v445_v25 }
 0x1f5   :  { %v496_v33 = vmax.f32 %v487_v30, 0.0 }
 0x1f7   :  { %v516_v44 = vmul.f32 %v505_v39, %v496_v33 }
 0x1f9   :  { %v519_v47 = vadd.f32 %v516_v44, %v515_v45 }
 0x1fa   :  { %v489_v27 = vpop.f32.mrf.mxu2 }
 0x1fb   :  { %v490_v31 = vadd.f32 %v489_v27, %v450_v21 }
 0x1fd   :  { %v497_v41 = vmax.f32 %v490_v31, 0.0 }
 0x1ff   :  { %v517_v36 = vmul.f32 %v509_v32, %v497_v41 }
 0x201   :  { %v520_v50 = vadd.f32 %v519_v47, %v517_v36 }
 0x202   :  { %v492_v35 = vpop.f32.mrf.mxu2 }
 0x203   :  { %v493_v46 = vadd.f32 %v492_v35, %v455_v0 }
 0x205   :  { %v498_v48 = vmax.f32 %v493_v46, 0.0 }
 0x207   :  { %v518_v51 = vmul.f32 %v513_v49, %v498_v48 }
 0x209   :  { %v521_v53 = vadd.f32 %v520_v50, %v518_v51 }
 0x20b   :  { %v522_v54 = vrot.slane %v521_v53, 4 }
 0x20d   :  { %v523_v55 = vadd.f32 %v522_v54, %v521_v53 }
 0x20f   :  { %v524_v57 = vrot.slane %v523_v55, 2 }
 0x211   :  { %v525_v26 = vadd.f32 %v524_v57, %v523_v55 }
 0x213   :  { %v526_v58 = vrot.slane %v525_v26, 1 }
 0x215   :  { %v527_v38 = vadd.f32 %v526_v58, %v525_v26 }
 0x217   :  { %v533_v22 = vadd.f32 %v531_v23, %v527_v38 }
 0x219   :  { %534 = vst [vmem:[%s804_s3] sm:$0x1] %v533_v22 }
 0x21a   :  { %539 = vsyncpa [#allocation3], 1 }

</bundles_post_ra>
